<compile_context>
chip_gen: v7x
topology: tpu7x:2x2x1
jax: 0.10.0
libtpu: 0.0.40
codegen_flags: <defaults>
</compile_context>

<pallas_src>
import jax
import jax.numpy as jnp
from jax.experimental import pallas as pl
from jax.experimental.pallas import tpu as pltpu


# --------------------------------------------------------------------------
# Stage 1: feature projection + per-head attention logits (row-tiled kernel)
# --------------------------------------------------------------------------
def _proj_kernel(h_ref, w_ref, albk_ref, arbk_ref, z_ref, el_ref, er_ref):
    # h_ref:    (TN, in_dim)       node-feature row tile
    # w_ref:    (in_dim, H*D) f32  fc weight (resident)
    # albk_ref: (H*D, H) f32       block-diagonal attn_l (resident)
    # arbk_ref: (H*D, H) f32       block-diagonal attn_r (resident)
    # z_ref:    (TN, H*D) bf16 out projected features for aggregation
    # el_ref:   (TN, H)   f32  out <z_n[h], a_l[h]>
    # er_ref:   (TN, H)   f32  out <z_n[h], a_r[h]>
    z = jnp.dot(h_ref[...].astype(jnp.bfloat16),
                w_ref[...].astype(jnp.bfloat16),
                preferred_element_type=jnp.float32)            # (TN, H*D) f32
    z_ref[...] = z.astype(jnp.bfloat16)
    # Per-head logits via one MXU matmul each (no XLU lane reductions).
    el_ref[...] = jnp.dot(z, albk_ref[...], preferred_element_type=jnp.float32)
    er_ref[...] = jnp.dot(z, arbk_ref[...], preferred_element_type=jnp.float32)


def _block_diag_attn(a):
    """(H, D) per-head attention vectors -> (H*D, H) block-diagonal matrix."""
    num_heads, d_head = a.shape
    eye = jnp.eye(num_heads, dtype=a.dtype)
    return (a[:, :, None] * eye[:, None, :]).reshape(num_heads * d_head, num_heads)


# --------------------------------------------------------------------------
# Stage 2: masked edge-softmax + attention aggregation, tiled over dst rows
# --------------------------------------------------------------------------
def _make_attn_kernel(num_heads: int, d_head: int):
    H, D = num_heads, d_head

    def kernel(adj_ref, er_ref, elT_ref, z_ref, b_ref, out_ref, acc_ref):
        # adj_ref: (TM, N) f32   adjacency rows for this dst tile
        # er_ref:  (TM, H) f32   dst-side logits
        # elT_ref: (H, N)  f32   src-side logits (lane-major per head)
        # z_ref:   (N, H*D) bf16 projected source features (resident)
        # b_ref:   (1, H*D) f32  bias (resident)
        # out_ref: (TM, H*D)
        # acc_ref: (TM, H*D) f32 VMEM scratch (all heads assembled here)
        adj = adj_ref[...]
        # Hoisted once per tile (not per head): -inf bias on non-edges.
        mask_bias = jnp.where(adj > 0, 0.0, -1e30)

        for h in range(H):                                     # static unrolled
            # e[dst, src] = leaky_relu(er[dst] + el[src], 0.2)
            s = er_ref[:, h:h + 1] + elT_ref[h:h + 1, :]       # (TM, N)
            s = jnp.where(s > 0, s, 0.2 * s)
            s = s + mask_bias
            # edge softmax over incoming edges (src axis)
            m = jnp.max(s, axis=-1, keepdims=True)
            p = jnp.exp(s - m) * adj            # exact mask + zero-in-degree guard
            denom = jnp.sum(p, axis=-1, keepdims=True)
            inv = pl.reciprocal(jnp.where(denom > 0, denom, 1.0), approx=True)
            alpha = (p * inv).astype(jnp.bfloat16)             # (TM, N) bf16
            # aggregate: out[dst] = sum_src alpha[dst, src] * z[src]
            # (per-head z slice loaded from the ref inside the loop to keep
            #  vreg pressure low)
            acc_ref[:, h * D:(h + 1) * D] = jnp.dot(
                alpha, z_ref[:, h * D:(h + 1) * D],
                preferred_element_type=jnp.float32)            # (TM, D)

        agg = acc_ref[...] + b_ref[...]                        # (TM, H*D)
        # F.elu (alpha=1.0); single lane-dense full-width store.
        out_ref[...] = jnp.where(
            agg > 0, agg, jnp.expm1(jnp.minimum(agg, 0.0))).astype(out_ref.dtype)

    return kernel


def _pick_tile_m(n_nodes: int, row_bytes: int, budget_bytes: int = 4 << 20) -> int:
    """Largest dst-row tile (multiple of 16, divides N) whose double-buffered
    adjacency slab (2 * tile_m * row_bytes) stays within a v7x-safe budget."""
    for t in (256, 128, 64, 32, 16):
        if t <= n_nodes and n_nodes % t == 0 and 2 * t * row_bytes <= budget_bytes:
            return t
    return n_nodes  # tiny / awkward graphs: single full block


def _pick_tile_rows(n_nodes: int) -> int:
    """Row tile for the projection kernel (multiple of 16, divides N)."""
    for t in (512, 256, 128, 64, 32, 16):
        if t <= n_nodes and n_nodes % t == 0:
            return t
    return n_nodes


def gat_layer_pallas(h, w, al, ar, b, adj, num_heads, d_head, *,
                     out_dtype=jnp.float32, tile_m=None):
    """One GATLayer (GATConv + ELU): projection kernel + dst-tiled attention kernel."""
    N, in_dim = h.shape
    H, D = num_heads, d_head
    HD = H * D

    al_blk = _block_diag_attn(al)                              # (HD, H)
    ar_blk = _block_diag_attn(ar)                              # (HD, H)

    # ---- stage 1: projection, tiled over node rows ----
    tile_n = _pick_tile_rows(N)
    z_bf16, el, er = pl.pallas_call(
        _proj_kernel,
        out_shape=(jax.ShapeDtypeStruct((N, HD), jnp.bfloat16),
                   jax.ShapeDtypeStruct((N, H), jnp.float32),
                   jax.ShapeDtypeStruct((N, H), jnp.float32)),
        grid=(N // tile_n,),
        in_specs=[
            pl.BlockSpec((tile_n, in_dim), lambda i: (i, 0)),  # h row tile
            pl.BlockSpec((in_dim, HD), lambda i: (0, 0)),      # W (resident)
            pl.BlockSpec((HD, H), lambda i: (0, 0)),           # attn_l blk (resident)
            pl.BlockSpec((HD, H), lambda i: (0, 0)),           # attn_r blk (resident)
        ],
        out_specs=(
            pl.BlockSpec((tile_n, HD), lambda i: (i, 0)),
            pl.BlockSpec((tile_n, H), lambda i: (i, 0)),
            pl.BlockSpec((tile_n, H), lambda i: (i, 0)),
        ),
        compiler_params=pltpu.CompilerParams(
            dimension_semantics=("parallel",)),
    )(h, w, al_blk, ar_blk)

    # Tiny layout glue: each dst tile wants el as a lane-major (1, N) row per head.
    elT = jnp.transpose(el)                                    # (H, N)

    # ---- stage 2: masked edge-softmax + aggregation, tiled over dst rows ----
    if tile_m is None:
        tile_m = _pick_tile_m(N, row_bytes=N * 4)
    assert N % tile_m == 0 and (tile_m % 8 == 0 or tile_m == N)

    kernel = _make_attn_kernel(H, D)
    return pl.pallas_call(
        kernel,
        out_shape=jax.ShapeDtypeStruct((N, HD), out_dtype),
        grid=(N // tile_m,),
        in_specs=[
            pl.BlockSpec((tile_m, N), lambda i: (i, 0)),       # adj dst tile
            pl.BlockSpec((tile_m, H), lambda i: (i, 0)),       # er dst tile
            pl.BlockSpec((H, N), lambda i: (0, 0)),            # elT (resident)
            pl.BlockSpec((N, HD), lambda i: (0, 0)),           # z bf16 (resident)
            pl.BlockSpec((1, HD), lambda i: (0, 0)),           # bias (resident)
        ],
        out_specs=pl.BlockSpec((tile_m, HD), lambda i: (i, 0)),
        scratch_shapes=[pltpu.VMEM((tile_m, HD), jnp.float32)],
        compiler_params=pltpu.CompilerParams(
            dimension_semantics=("parallel",)),                # megacore on v7x
    )(adj, er, elT, z_bf16, b)


def gat2_forward(adj, features, x, params, *, num_heads, hidden_dim, d_model,
                 tile_m=None):
    """Mirrors GAT2.forward(g, features, x)."""
    # layer1: GATConv(in_dim, hidden_dim, num_heads) + ELU -> (N, H*hidden)
    # Emit bf16: it is only consumed by layer2's bf16 projection cast, so this
    # is numerically identical and halves the intermediate HBM traffic.
    h = gat_layer_pallas(features, params["w1"], params["al1"], params["ar1"],
                         params["b1"], adj, num_heads, hidden_dim,
                         out_dtype=jnp.bfloat16, tile_m=tile_m)
    # h.view(N, -1) is already the (N, H*hidden) kernel output layout.
    # layer2: GATConv(H*hidden, d_model, 1) + ELU -> (N, d_model)
    h = gat_layer_pallas(h, params["w2"], params["al2"], params["ar2"],
                         params["b2"], adj, 1, d_model,
                         out_dtype=jnp.float32, tile_m=tile_m)
    # expand/reshape/gather: x indexes nodes in [0, N), so gather h directly
    # (no batch-tiled copy of h is needed -- identical result, no HBM waste).
    batch_size, seq_len = x.shape
    out = jnp.take(h, x.reshape(-1), axis=0)
    return out.reshape(batch_size, seq_len, d_model)


# --------------------------------------------------------------------------
# Pure-JAX f32 reference (for a loose correctness check in the demo)
# --------------------------------------------------------------------------
def _gat_layer_ref(h, w, al, ar, b, adj, H, D):
    N = h.shape[0]
    z = jnp.dot(h.astype(jnp.float32), w).reshape(N, H, D)
    el = jnp.einsum("nhd,hd->nh", z, al)                       # src-side
    er = jnp.einsum("nhd,hd->nh", z, ar)                       # dst-side
    e = er[:, None, :] + el[None, :, :]                        # (dst, src, head)
    e = jnp.where(e > 0, e, 0.2 * e)
    e = jnp.where(adj[:, :, None] > 0, e, -1e30)
    m = jnp.max(e, axis=1, keepdims=True)
    p = jnp.exp(e - m) * adj[:, :, None]
    denom = jnp.sum(p, axis=1, keepdims=True)
    alpha = p / jnp.where(denom > 0, denom, 1.0)
    out = jnp.einsum("dsh,shf->dhf", alpha, z).reshape(N, H * D) + b
    return jnp.where(out > 0, out, jnp.expm1(jnp.minimum(out, 0.0)))


def _gat2_ref(adj, features, x, params, *, num_heads, hidden_dim, d_model):
    h = _gat_layer_ref(features, params["w1"], params["al1"], params["ar1"],
                       params["b1"], adj, num_heads, hidden_dim)
    h = _gat_layer_ref(h, params["w2"], params["al2"], params["ar2"],
                       params["b2"], adj, 1, d_model)
    bsz, seq = x.shape
    return jnp.take(h, x.reshape(-1), axis=0).reshape(bsz, seq, d_model)


if __name__ == "__main__":
    # small, shape-consistent config
    N = 32            # number of graph nodes
    in_dim = 8
    hidden_dim = 8
    num_heads = 4
    d_model = 16      # out_dim of layer2 must equal d_model for the final reshape
    batch, seq_len = 2, 8
    tile_m = 16       # grid=(2,) so the dst-row tiled pipeline is exercised

    key = jax.random.PRNGKey(0)
    k = jax.random.split(key, 8)

    # node features
    features = jax.random.normal(k[0], (N, in_dim), dtype=jnp.float32)

    # graph: bidirectional ring + self loops; adj[dst, src]
    idx = jnp.arange(N)
    adj = jnp.eye(N, dtype=jnp.float32)
    adj = adj.at[(idx + 1) % N, idx].set(1.0)
    adj = adj.at[idx, (idx + 1) % N].set(1.0)

    # deterministic parameter init (GATConv: fc weight, attn_l, attn_r, bias)
    params = {
        "w1":  (jax.random.normal(k[1], (in_dim, num_heads * hidden_dim), jnp.float32)
                / jnp.sqrt(jnp.float32(in_dim))),
        "al1": jax.random.normal(k[2], (num_heads, hidden_dim), jnp.float32) * 0.1,
        "ar1": jax.random.normal(k[3], (num_heads, hidden_dim), jnp.float32) * 0.1,
        "b1":  jnp.zeros((1, num_heads * hidden_dim), jnp.float32),
        "w2":  (jax.random.normal(k[4], (num_heads * hidden_dim, d_model), jnp.float32)
                / jnp.sqrt(jnp.float32(num_heads * hidden_dim))),
        "al2": jax.random.normal(k[5], (1, d_model), jnp.float32) * 0.1,
        "ar2": jax.random.normal(k[6], (1, d_model), jnp.float32) * 0.1,
        "b2":  jnp.zeros((1, d_model), jnp.float32),
    }

    # token-to-node index map x: (batch, seq_len) int32 in [0, N)
    x = jax.random.randint(k[7], (batch, seq_len), 0, N, dtype=jnp.int32)

    out = gat2_forward(adj, features, x, params, num_heads=num_heads,
                       hidden_dim=hidden_dim, d_model=d_model, tile_m=tile_m)
    jax.block_until_ready(out)

    assert out.shape == (batch, seq_len, d_model)
    assert bool(jnp.all(jnp.isfinite(out)))

    # loose check against the pure-JAX f32 reference (bf16 MXU operand tolerance)
    ref = _gat2_ref(adj, features, x, params, num_heads=num_heads,
                    hidden_dim=hidden_dim, d_model=d_model)
    assert bool(jnp.allclose(out.astype(jnp.float32), ref, atol=7.5e-2, rtol=7.5e-2))

    print("KERNEL_OK")
</pallas_src>

<mosaic_0001>
module attributes {stable_mosaic.version = 11 : i64} {
  func.func @_proj_kernel(%arg0: i32, %arg1: memref<32x8xf32, #tpu.memory_space<vmem>>, %arg2: memref<8x32xf32, #tpu.memory_space<vmem>>, %arg3: memref<32x4xf32, #tpu.memory_space<vmem>>, %arg4: memref<32x4xf32, #tpu.memory_space<vmem>>, %arg5: memref<32x32xbf16, #tpu.memory_space<vmem>>, %arg6: memref<32x4xf32, #tpu.memory_space<vmem>>, %arg7: memref<32x4xf32, #tpu.memory_space<vmem>>) attributes {dimension_semantics = [#tpu.dimension_semantics<parallel>], iteration_bounds = array<i64: 1>, scalar_prefetch = 0 : i64, scratch_operands = 0 : i64, tpu.core_type = #tpu.core_type<tc>, window_params = [{transform_indices = @transform_0, window_bounds = array<i64: 32, 8>}, {pipeline_mode = #tpu.pipeline_mode<synchronous>, transform_indices = @transform_1, window_bounds = array<i64: 8, 32>}, {pipeline_mode = #tpu.pipeline_mode<synchronous>, transform_indices = @transform_2, window_bounds = array<i64: 32, 4>}, {pipeline_mode = #tpu.pipeline_mode<synchronous>, transform_indices = @transform_3, window_bounds = array<i64: 32, 4>}, {transform_indices = @transform_4, window_bounds = array<i64: 32, 32>}, {transform_indices = @transform_5, window_bounds = array<i64: 32, 4>}, {transform_indices = @transform_6, window_bounds = array<i64: 32, 4>}]} {
    %c0 = arith.constant 0 : index
    %c0_0 = arith.constant 0 : index
    %0 = vector.load %arg1[%c0, %c0_0] : memref<32x8xf32, #tpu.memory_space<vmem>>, vector<32x8xf32>
    %1 = arith.truncf %0 : vector<32x8xf32> to vector<32x8xbf16>
    %c0_1 = arith.constant 0 : index
    %c0_2 = arith.constant 0 : index
    %2 = vector.load %arg2[%c0_1, %c0_2] : memref<8x32xf32, #tpu.memory_space<vmem>>, vector<8x32xf32>
    %3 = arith.truncf %2 : vector<8x32xf32> to vector<8x32xbf16>
    %cst = arith.constant dense<0.000000e+00> : vector<32x32xf32>
    %4 = tpu.matmul %1, %3, %cst {dimension_numbers = #tpu.dot_dimension_numbers<[1], [0], [0], [1], [0, 0, 1, 1], [], []>} : vector<32x8xbf16>, vector<8x32xbf16>, vector<32x32xf32> -> vector<32x32xf32>
    %5 = arith.truncf %4 : vector<32x32xf32> to vector<32x32xbf16>
    %c0_3 = arith.constant 0 : index
    %c0_4 = arith.constant 0 : index
    %6 = vector.load %arg5[%c0_3, %c0_4] : memref<32x32xbf16, #tpu.memory_space<vmem>>, vector<32x32xbf16>
    tpu.vector_store %arg5[%c0_3, %c0_4], %5 {strides = array<i32>} : memref<32x32xbf16, #tpu.memory_space<vmem>>, vector<32x32xbf16>,
    %c0_5 = arith.constant 0 : index
    %c0_6 = arith.constant 0 : index
    %7 = vector.load %arg3[%c0_5, %c0_6] : memref<32x4xf32, #tpu.memory_space<vmem>>, vector<32x4xf32>
    %cst_7 = arith.constant dense<0.000000e+00> : vector<32x4xf32>
    %8 = tpu.matmul %4, %7, %cst_7 {dimension_numbers = #tpu.dot_dimension_numbers<[1], [0], [0], [1], [0, 0, 1, 1], [], []>} : vector<32x32xf32>, vector<32x4xf32>, vector<32x4xf32> -> vector<32x4xf32>
    %c0_8 = arith.constant 0 : index
    %c0_9 = arith.constant 0 : index
    %9 = vector.load %arg6[%c0_8, %c0_9] : memref<32x4xf32, #tpu.memory_space<vmem>>, vector<32x4xf32>
    tpu.vector_store %arg6[%c0_8, %c0_9], %8 {strides = array<i32>} : memref<32x4xf32, #tpu.memory_space<vmem>>, vector<32x4xf32>,
    %c0_10 = arith.constant 0 : index
    %c0_11 = arith.constant 0 : index
    %10 = vector.load %arg4[%c0_10, %c0_11] : memref<32x4xf32, #tpu.memory_space<vmem>>, vector<32x4xf32>
    %cst_12 = arith.constant dense<0.000000e+00> : vector<32x4xf32>
    %11 = tpu.matmul %4, %10, %cst_12 {dimension_numbers = #tpu.dot_dimension_numbers<[1], [0], [0], [1], [0, 0, 1, 1], [], []>} : vector<32x32xf32>, vector<32x4xf32>, vector<32x4xf32> -> vector<32x4xf32>
    %c0_13 = arith.constant 0 : index
    %c0_14 = arith.constant 0 : index
    %12 = vector.load %arg7[%c0_13, %c0_14] : memref<32x4xf32, #tpu.memory_space<vmem>>, vector<32x4xf32>
    tpu.vector_store %arg7[%c0_13, %c0_14], %11 {strides = array<i32>} : memref<32x4xf32, #tpu.memory_space<vmem>>, vector<32x4xf32>,
    return
  }
  func.func @transform_0(%arg0: i32) -> (i32, i32) {
    %c0_i32 = arith.constant 0 : i32
    %c0_i32_0 = arith.constant 0 : i32
    return %arg0, %c0_i32 : i32, i32
  }
  func.func @transform_1(%arg0: i32) -> (i32, i32) {
    %c0_i32 = arith.constant 0 : i32
    %c0_i32_0 = arith.constant 0 : i32
    %c0_i32_1 = arith.constant 0 : i32
    return %c0_i32, %c0_i32_0 : i32, i32
  }
  func.func @transform_2(%arg0: i32) -> (i32, i32) {
    %c0_i32 = arith.constant 0 : i32
    %c0_i32_0 = arith.constant 0 : i32
    %c0_i32_1 = arith.constant 0 : i32
    return %c0_i32, %c0_i32_0 : i32, i32
  }
  func.func @transform_3(%arg0: i32) -> (i32, i32) {
    %c0_i32 = arith.constant 0 : i32
    %c0_i32_0 = arith.constant 0 : i32
    %c0_i32_1 = arith.constant 0 : i32
    return %c0_i32, %c0_i32_0 : i32, i32
  }
  func.func @transform_4(%arg0: i32) -> (i32, i32) {
    %c0_i32 = arith.constant 0 : i32
    %c0_i32_0 = arith.constant 0 : i32
    return %arg0, %c0_i32 : i32, i32
  }
  func.func @transform_5(%arg0: i32) -> (i32, i32) {
    %c0_i32 = arith.constant 0 : i32
    %c0_i32_0 = arith.constant 0 : i32
    return %arg0, %c0_i32 : i32, i32
  }
  func.func @transform_6(%arg0: i32) -> (i32, i32) {
    %c0_i32 = arith.constant 0 : i32
    %c0_i32_0 = arith.constant 0 : i32
    return %arg0, %c0_i32 : i32, i32
  }
}

</mosaic_0001>

<bundles_post_ra>
// kernel: tpu_custom_call.1
= control target key start
LH: loop header
LB: loop body
LE: loop exit
PB: predicated region body
PF: predicated region fallthrough
CT: control target
= control target key end

     0   :  { %vm37_vm0 = vcmask 1043456   ;;  %vm30_vm1 = vcmask 64512   ;;  %s585_s0 = inlined_call_operand.vmem [shape: f32[32,8], index: 0, kind: input, shape index: {}]   ;;  %s586_s1 = inlined_call_operand.vmem [shape: f32[8,32], index: 1, kind: input, shape index: {}]   ;;  %s587_s2 = inlined_call_operand.vmem [shape: f32[32,4], index: 2, kind: input, shape index: {}]   ;;  %s588_s3 = inlined_call_operand.vmem [shape: f32[32,4], index: 3, kind: input, shape index: {}]   ;;  %s589_s4 = inlined_call_operand.hbm [shape: bf16[32,32], index: 4, kind: output, shape index: {0}]   ;;  %s590_s5 = inlined_call_operand.vmem [shape: f32[32,4], index: 5, kind: output, shape index: {1}]   ;;  %s591_s6 = inlined_call_operand.vmem [shape: f32[32,4], index: 6, kind: output, shape index: {2}]  }
   0x1   :  { %v28_v0 = vld [vmem:[%s586_s1] sm:$0xff]  ;;  %v23_v2 = vld [vmem:[%s585_s0 + $0x8] sm:$0xff]  ;;  %v24_v5 = vld [vmem:[%s585_s0 + $0x10] sm:$0xff] }
   0x2   :  { %v22_v1 = vld [vmem:[%s585_s0] sm:$0xff]  ;;  %v29_v3 = vpack.c.bf16 %v28_v0, %v28_v0  ;;  %v25_v6 = vld [vmem:[%s585_s0 + $0x18] sm:$0xff]  ;;  %v219_v8 = vld [vmem:[%s588_s3 + $0x8] sm:$0xff] }
   0x3   :  { %v26_v4 = vpack.c.bf16 %v23_v2, %v22_v1  ;;  %v218_v7 = vld [vmem:[%s588_s3] sm:$0xff]  ;;  %v112_v10 = vld [vmem:[%s587_s2 + $0x8] sm:$0xff]  ;;  %v27_v12 = vpack.c.bf16 %v25_v6, %v24_v5  ;;  %v220_v15 = vld [vmem:[%s588_s3 + $0x10] sm:$0xff] }
   0x4   :  { %v111_v9 = vld [vmem:[%s587_s2] sm:$0xff]  ;;  %422 = vmatprep.subr.msk.bf16.mxu0 %vm37_vm0, %v29_v3  ;;  %v39_v11 = vsel %vm37_vm0, %v29_v3, 0  ;;  %v414_v13 = vpack.c.bf16 %v219_v8, %v218_v7  ;;  %v221_v16 = vld [vmem:[%s588_s3 + $0x18] sm:$0xff] }
   0x5   :  { %374 = vmatprep.mubr.msk.bf16.mxu0 %vm30_vm1, %v26_v4  ;;  %v406_v14 = vpack.c.bf16 %v112_v10, %v111_v9 }
   0x6   :  { %12 = vsyncpa [#allocation3], 0  ;;  %373 = vmatpush3.bf16.msra.mxu0 %v39_v11  ;;  %v418_v17 = vpack.c.bf16 %v221_v16, %v220_v15  ;;  %v113_v18 = vld [vmem:[%s587_s2 + $0x10] sm:$0xff]  ;;  %v114_v19 = vld [vmem:[%s587_s2 + $0x18] sm:$0xff]  ;;  %vm115_vm2 = vcmask 261120   ;;  %vm106_vm3 = vcmask 257024  }
   0x7   :  { %415 = vmatprep.subr.bf16.mxu0 %v414_v13  ;;  %407 = vmatprep.subr.bf16.mxu1 %v406_v14  ;;  %v410_v20 = vpack.c.bf16 %v114_v19, %v113_v18  ;;  %s450_s2 = smov [#allocation2]  }
   0x8   :  { %409 = vmatpush3.bf16.msra.mxu1 %v406_v14  ;;  %s316_s3 = sshll.u32 %s450_s2, 4  ;;  %s317_s3 = int_to_ptr.vmem [resolvable:$true] %s316_s3 }
   0x9   :  { %375 = vmatmul.mubr.msk.bf16.vlgmr.msra.gmra.mrb[0].mxu0 %vm30_vm1, %v27_v12  ;;  %411 = vmatprep.subr.bf16.mxu1 %v410_v20  ;;  %s426_s21 = scalar_lea.vmem %s317_s3, 256  ;;  %p431_p1 = scmp.lt.s32.totalorder %s317_s3, %s317_s3 }
   0xa   :  { %417 = vmatpush3.bf16.msra.mxu0 %v414_v13  ;;  %p427_p0 = scmp.ne.s32.totalorder %s317_s3, %s426_s21  ;;  %p432_p2 = scmp.lt.s32.totalorder %s426_s21, %s426_s21 }
   0xb   :  { %419 = vmatprep.subr.bf16.mxu0 %v418_v17 }
   0xc   :  { %413 = vmatpush3.bf16.msra.mxu1 %v410_v20  ;;  %p433_p3 = por %p432_p2, %p431_p1 }
   0xe   :  { %421 = vmatpush3.bf16.msra.mxu0 %v418_v17  ;;  %p434_p4 = pnand %p433_p3, %p427_p0 }
  0xdc   :  { %v376_v21 = vpop.f32.mrb[0].mxu0 }
  0xdd   :  { %v351_v22 = vpack.c.bf16 %v376_v21, %v376_v21  ;;  %v75_v23 = vpop.f32.mrb[1].mxu0 }
  0xde   :  { %v349_v24 = vpack.c.bf16 %v75_v23, %v75_v23  ;;  %v377_v25 = vpop.f32.mrb[2].mxu0  ;;  %386 = vmatprep.mubr.msk.f32.mxu1 %vm115_vm2, %v75_v23  ;;  %400 = vmatprep.mubr.msk.f32.mxu0 %vm115_vm2, %v75_v23 }
  0xdf   :  { %109 = vst.msk [vmem:[#allocation2 + $0x8] sm:$0xf] %vm106_vm3, %v351_v22  ;;  %v352_v26 = vpack.c.bf16 %v377_v25, %v377_v25  ;;  %v78_v27 = vpop.f32.mrb[3].mxu0 }
  0xe0   :  { %107 = vst.msk [vmem:[#allocation2] sm:$0xf] %vm106_vm3, %v349_v24  ;;  %v350_v28 = vpack.c.bf16 %v78_v27, %v78_v27  ;;  %387 = vmatmul.mubr.msk.f32.vlgmr.msra.gmra.mrb[0].mxu1 %vm115_vm2, %v78_v27  ;;  %401 = vmatmul.mubr.msk.f32.vlgmr.msra.gmra.mrb[4].mxu0 %vm115_vm2, %v78_v27 }
  0xe1   :  { %110 = vst.msk [vmem:[#allocation2 + $0xc] sm:$0xf] %vm106_vm3, %v352_v26  ;;  %389 = vmatprep.mubr.msk.f32.mxu1 %vm115_vm2, %v376_v21  ;;  %403 = vmatprep.mubr.msk.f32.mxu0 %vm115_vm2, %v376_v21 }
  0xe2   :  { %108 = vst.msk [vmem:[#allocation2 + $0x4] sm:$0xf] %vm106_vm3, %v350_v28 }
  0xe4   :  { %390 = vmatmul.mubr.msk.f32.gmra.mrb[2].mxu1 %vm115_vm2, %v377_v25  ;;  %404 = vmatmul.mubr.msk.f32.gmra.mrb[6].mxu0 %vm115_vm2, %v377_v25 }
  0xe5   :  { %437 = shalt.err (!%p434_p4)
}
  0xe6   :  { %s438_s24 = scalar_lea.hbm %s589_s4, 256 }
  0xe7   :  { %p439_p5 = scmp.ne.s32.totalorder %s589_s4, %s438_s24  ;;  %p442_p6 = scmp.lt.u32.totalorder %s438_s24, %s589_s4 }
  0xe9   :  { %p444_p7 = pnand %p442_p6, %p439_p5 }
  0xeb   :  { %447 = shalt.err (!%p444_p7)
}
  0xec   :  { %s451_s29 = smov 64   ;;  %s452_s30 = smov 4   ;;  %vm213_vm4 = vcmask 31744  }
  0xed   :  { %322 = dma.vmem_to_hbm [thread:$0]  %s317_s3, 256, %s589_s4, [#allocation3], %s451_s29, %s451_s29, %s452_s30  }
 0x1b3   :  { %v388_v29 = vpop.f32.mrb[0].mxu1  ;;  %v402_v30 = vpop.f32.mrb[4].mxu0 }
 0x1b4   :  { %215 = vst.msk [vmem:[%s590_s5 + $0x8] sm:$0xff] %vm213_vm4, %v388_v29  ;;  %308 = vst.msk [vmem:[%s591_s6 + $0x8] sm:$0xff] %vm213_vm4, %v402_v30  ;;  %v194_v31 = vpop.f32.mrb[1].mxu1  ;;  %v288_v32 = vpop.f32.mrb[5].mxu0 }
 0x1b5   :  { %214 = vst.msk [vmem:[%s590_s5] sm:$0xff] %vm213_vm4, %v194_v31  ;;  %307 = vst.msk [vmem:[%s591_s6] sm:$0xff] %vm213_vm4, %v288_v32 }
 0x1b7   :  { %v391_v33 = vpop.f32.mrb[2].mxu1  ;;  %v405_v34 = vpop.f32.mrb[6].mxu0 }
 0x1b8   :  { %217 = vst.msk [vmem:[%s590_s5 + $0x18] sm:$0xff] %vm213_vm4, %v391_v33  ;;  %310 = vst.msk [vmem:[%s591_s6 + $0x18] sm:$0xff] %vm213_vm4, %v405_v34  ;;  %v204_v35 = vpop.f32.mrb[3].mxu1  ;;  %v298_v36 = vpop.f32.mrb[7].mxu0 }
 0x1b9   :  { %216 = vst.msk [vmem:[%s590_s5 + $0x10] sm:$0xff] %vm213_vm4, %v204_v35  ;;  %309 = vst.msk [vmem:[%s591_s6 + $0x10] sm:$0xff] %vm213_vm4, %v298_v36 }
 0x1ba   :  { %448 = dma.done.wait [#allocation3], 256  }
 0x1bb   :  { %449 = vsyncadd [#allocation3], 4294967040 }
 0x1bc   :  { %334 = vsyncpa [#allocation3], 1 }

</bundles_post_ra>
